<compile_context>
chip_gen: v7x
topology: tpu7x:2x2x1
jax: 0.10.0
libtpu: 0.0.40
codegen_flags: <defaults>
</compile_context>

<pallas_src>
import jax
import jax.numpy as jnp
import numpy as np
from jax.experimental import pallas as pl
from jax.experimental.pallas import tpu as pltpu


def _mha_kernel(q_ref, a_ref, qw_ref, kvw_ref, g_ref, o_ref):
    TB = q_ref.shape[0]            # batch rows in this tile
    D2 = kvw_ref.shape[1]          # 2 * nh * att   (lanes: [values | keys])
    L = a_ref.shape[0] // TB       # action-list length

    # Input projections (MXU, bf16 operands, f32 accumulate).  qw = [0 | Q]
    # puts the query projection in the key lane half; kvw = [V | K] puts
    # values in lanes [0:D), keys in [D:2D).
    qp = jnp.dot(q_ref[...], qw_ref[...],
                 preferred_element_type=jnp.float32)                  # (TB, 2D)
    kv = jnp.dot(a_ref[...], kvw_ref[...],
                 preferred_element_type=jnp.float32)                  # (TB*L, 2D)
    kv3 = kv.reshape(TB, L, D2)

    # Per-head q.k, vectorized over (batch, position, head): the elementwise
    # product lives in the key lanes (value lanes are exactly 0), then one MXU
    # matmul with the constant block matrix G sums each head's key lanes and
    # broadcasts the (already /8-scaled) score across that head's value lanes.
    prod = qp[:, None, :] * kv3                                       # (TB, L, 2D) f32
    s = jnp.dot(prod.reshape(TB * L, D2).astype(jnp.bfloat16), g_ref[...],
                preferred_element_type=jnp.float32)                   # scale folded into G
    s3 = s.reshape(TB, L, D2)

    # Softmax over the L axis (identical across each head's value lanes;
    # key-lane columns hold all-zero scores and are dropped in the wrapper).
    m = jnp.max(s3, axis=1, keepdims=True)                            # (TB, 1, 2D)
    e = jnp.exp(s3 - m)
    denom = jnp.sum(e, axis=1, keepdims=True)                         # (TB, 1, 2D)
    # Exact reciprocal: kernel is HBM/MXU-push bound at these sizes, so the
    # EUP slot isn't the binding unit and approx=True buys nothing yet.
    p = e * pl.reciprocal(denom, approx=False)                        # (TB, L, 2D)

    # P @ V, vectorized: value lanes carry p*v; sum over positions on VPU/XLU.
    # Store the full 128-lane slab (lane-dense, unmasked stores); the key-lane
    # half is don't-care and is sliced off in the wrapper.
    o_ref[...] = jnp.sum(p * kv3, axis=1).astype(o_ref.dtype)         # (TB, 2D)


def _head_broadcast_matrix(nh, att):
    """(2D, 2D) block matrix: sums each head's key lanes and broadcasts the
    result into that head's value lanes, with the PyTorch /8.0 score scale
    folded in (0.125 is exactly representable in bf16)."""
    D = nh * att
    g = np.zeros((2 * D, 2 * D), dtype=np.float32)
    for h in range(nh):
        g[D + h * att: D + (h + 1) * att, h * att: (h + 1) * att] = 0.125
    return jnp.asarray(g, dtype=jnp.bfloat16)


def transformer_forward(query_input, action_list_input, Q, K, V, *, nh, att):
    B, seq_q, col = query_input.shape
    assert seq_q == 1, "forward() reshape implies query seq length == 1"
    _, L, act = action_list_input.shape
    D = nh * att
    D2 = 2 * D
    assert Q.shape == (col, D) and K.shape == (act, D) and V.shape == (act, D)

    # Weight prep (tiny, one-time): fused/padded so the kernel is lane-dense,
    # cast to bf16 for single-pass MXU matmuls (f32 accumulation in-kernel).
    qw = jnp.concatenate([jnp.zeros((col, D), Q.dtype), Q],
                         axis=1).astype(jnp.bfloat16)                  # (col, 2D)
    kvw = jnp.concatenate([V, K], axis=1).astype(jnp.bfloat16)         # (act, 2D)
    g = _head_broadcast_matrix(nh, att)                                # (2D, 2D) bf16

    q2d = query_input.reshape(B, col).astype(jnp.bfloat16)
    a2d = action_list_input.reshape(B * L, act).astype(jnp.bfloat16)

    # Batch-tile selection:
    #  * pad the batch to a multiple of 8 (sublane-aligned tiles, zero rows
    #    softmax to a harmless uniform distribution and are sliced off),
    #  * cap TB so the f32 intermediates (kv/prod/s/e/p ~ 6*TB*L*2D*4 B) stay
    #    inside a conservative 16 MiB budget (fits every chip once the scoped
    #    VMEM limit is raised to 32 MiB; v7x only has 64 MiB physical),
    #  * for mid-size batches use exactly 2 grid steps so the "parallel" axis
    #    can shard across v7x's two TensorCores (one extra ~0.35us step is
    #    noise on v5e/v6e).
    inter_bytes_per_row = 6 * L * D2 * 4
    tb_cap = max(16, min(512, ((16 << 20) // inter_bytes_per_row // 16) * 16))
    Bp8 = ((B + 7) // 8) * 8
    if Bp8 <= 32:
        TB, Bp = Bp8, Bp8                       # single step, full-array blocks
    elif Bp8 <= 2 * tb_cap:
        TB = ((Bp8 + 31) // 32) * 16            # ~half the batch, multiple of 16
        Bp = 2 * TB                             # 2 parallel steps (v7x: 2 TCs)
    else:
        TB = tb_cap
        Bp = ((B + TB - 1) // TB) * TB
    if Bp != B:
        q2d = jnp.pad(q2d, ((0, Bp - B), (0, 0)))
        a2d = jnp.pad(a2d, ((0, (Bp - B) * L), (0, 0)))

    flops = (2 * Bp * col * D2 + 2 * Bp * L * act * D2
             + 2 * Bp * L * D2 * D2)
    bytes_accessed = (2 * (Bp * col + Bp * L * act + col * D2 + act * D2
                           + D2 * D2)            # bf16 inputs/weights
                      + 4 * Bp * D2)             # f32 lane-dense output

    out = pl.pallas_call(
        _mha_kernel,
        out_shape=jax.ShapeDtypeStruct((Bp, D2), jnp.float32),
        grid=(Bp // TB,),
        in_specs=[
            pl.BlockSpec((TB, col), lambda i: (i, 0)),
            pl.BlockSpec((TB * L, act), lambda i: (i, 0)),
            pl.BlockSpec((col, D2), lambda i: (0, 0)),
            pl.BlockSpec((act, D2), lambda i: (0, 0)),
            pl.BlockSpec((D2, D2), lambda i: (0, 0)),
        ],
        out_specs=pl.BlockSpec((TB, D2), lambda i: (i, 0)),
        compiler_params=pltpu.CompilerParams(
            dimension_semantics=("parallel",),
            vmem_limit_bytes=32 << 20),
        cost_estimate=pl.CostEstimate(flops=flops,
                                      transcendentals=Bp * L * D2,
                                      bytes_accessed=bytes_accessed),
    )(q2d, a2d, qw, kvw, g)
    # Keep the value-lane half and the real batch rows.
    return out[:B, :D]


def _reference(query_input, action_list_input, Q, K, V, nh, att):
    # Pure-JAX transcription of the PyTorch forward, for verification (f32).
    querys = jnp.einsum("bqc,cd->bqd", query_input, Q)
    keys = jnp.einsum("blc,cd->bld", action_list_input, K)
    values = jnp.einsum("blc,cd->bld", action_list_input, V)
    querys = jnp.stack(jnp.split(querys, nh, axis=2))      # (nh, B, 1, att)
    keys = jnp.stack(jnp.split(keys, nh, axis=2))
    values = jnp.stack(jnp.split(values, nh, axis=2))
    ip = jnp.matmul(querys, jnp.swapaxes(keys, -2, -1)) / 8.0
    att_scores = jax.nn.softmax(ip, axis=-1)
    result = jnp.matmul(att_scores, values)                 # (nh, B, 1, att)
    result = jnp.transpose(result, (1, 2, 0, 3))            # (B, 1, nh, att)
    return result.reshape(query_input.shape[0], nh * att)


def _xavier_uniform(key, fan_in, fan_out, dtype=jnp.float32):
    bound = float(np.sqrt(6.0 / (fan_in + fan_out)))
    return jax.random.uniform(key, (fan_in, fan_out), dtype=dtype,
                              minval=-bound, maxval=bound)


if __name__ == "__main__":
    # Module hyper-params (defaults from __init__, small `col`).
    col = 32
    nh = 4
    action_item_size = 64
    att_emb_size = 16

    # Small input shapes.
    B = 2      # batch
    L = 8      # action list length

    key = jax.random.PRNGKey(0)
    kq, kk, kv, kx, ka = jax.random.split(key, 5)

    Q = _xavier_uniform(kq, col, att_emb_size * nh)
    K = _xavier_uniform(kk, action_item_size, att_emb_size * nh)
    V = _xavier_uniform(kv, action_item_size, att_emb_size * nh)

    query_input = jax.random.normal(kx, (B, 1, col), dtype=jnp.float32)
    action_list_input = jax.random.normal(ka, (B, L, action_item_size),
                                          dtype=jnp.float32)

    out = transformer_forward(query_input, action_list_input, Q, K, V,
                              nh=nh, att=att_emb_size)
    out = jax.block_until_ready(out)

    ref = _reference(query_input, action_list_input, Q, K, V, nh, att_emb_size)
    # Tolerance: the kernel feeds the MXU bf16 operands (f32 accumulation), so
    # inputs/weights/scores carry ~0.4% relative bf16 rounding vs the all-f32
    # reference; 2e-2 comfortably covers that while still catching structural
    # errors, which would be O(0.1)+.
    np.testing.assert_allclose(np.asarray(out), np.asarray(ref),
                               rtol=2e-2, atol=2e-2)
    print("KERNEL_OK")
</pallas_src>

<mosaic_0001>
module attributes {stable_mosaic.version = 11 : i64} {
  func.func @_mha_kernel(%arg0: i32, %arg1: memref<8x32xbf16, #tpu.memory_space<vmem>>, %arg2: memref<64x64xbf16, #tpu.memory_space<vmem>>, %arg3: memref<32x128xbf16, #tpu.memory_space<vmem>>, %arg4: memref<64x128xbf16, #tpu.memory_space<vmem>>, %arg5: memref<128x128xbf16, #tpu.memory_space<vmem>>, %arg6: memref<8x128xf32, #tpu.memory_space<vmem>>) attributes {dimension_semantics = [#tpu.dimension_semantics<parallel>], iteration_bounds = array<i64: 1>, scalar_prefetch = 0 : i64, scratch_operands = 0 : i64, tpu.core_type = #tpu.core_type<tc>, window_params = [{transform_indices = @transform_0, window_bounds = array<i64: 8, 32>}, {transform_indices = @transform_1, window_bounds = array<i64: 64, 64>}, {pipeline_mode = #tpu.pipeline_mode<synchronous>, transform_indices = @transform_2, window_bounds = array<i64: 32, 128>}, {pipeline_mode = #tpu.pipeline_mode<synchronous>, transform_indices = @transform_3, window_bounds = array<i64: 64, 128>}, {pipeline_mode = #tpu.pipeline_mode<synchronous>, transform_indices = @transform_4, window_bounds = array<i64: 128, 128>}, {transform_indices = @transform_5, window_bounds = array<i64: 8, 128>}]} {
    %c0 = arith.constant 0 : index
    %c0_0 = arith.constant 0 : index
    %0 = vector.load %arg1[%c0, %c0_0] : memref<8x32xbf16, #tpu.memory_space<vmem>>, vector<8x32xbf16>
    %c0_1 = arith.constant 0 : index
    %c0_2 = arith.constant 0 : index
    %1 = vector.load %arg3[%c0_1, %c0_2] : memref<32x128xbf16, #tpu.memory_space<vmem>>, vector<32x128xbf16>
    %cst = arith.constant dense<0.000000e+00> : vector<8x128xf32>
    %2 = tpu.matmul %0, %1, %cst {dimension_numbers = #tpu.dot_dimension_numbers<[1], [0], [0], [1], [0, 0, 1, 1], [], []>} : vector<8x32xbf16>, vector<32x128xbf16>, vector<8x128xf32> -> vector<8x128xf32>
    %c0_3 = arith.constant 0 : index
    %c0_4 = arith.constant 0 : index
    %3 = vector.load %arg2[%c0_3, %c0_4] : memref<64x64xbf16, #tpu.memory_space<vmem>>, vector<64x64xbf16>
    %c0_5 = arith.constant 0 : index
    %c0_6 = arith.constant 0 : index
    %4 = vector.load %arg4[%c0_5, %c0_6] : memref<64x128xbf16, #tpu.memory_space<vmem>>, vector<64x128xbf16>
    %cst_7 = arith.constant dense<0.000000e+00> : vector<64x128xf32>
    %5 = tpu.matmul %3, %4, %cst_7 {dimension_numbers = #tpu.dot_dimension_numbers<[1], [0], [0], [1], [0, 0, 1, 1], [], []>} : vector<64x64xbf16>, vector<64x128xbf16>, vector<64x128xf32> -> vector<64x128xf32>
    %6 = vector.shape_cast %5 : vector<64x128xf32> to vector<8x8x128xf32>
    %7 = vector.shape_cast %2 : vector<8x128xf32> to vector<8x1x128xf32>
    %8 = vector.broadcast %7 : vector<8x1x128xf32> to vector<8x8x128xf32>
    %9 = arith.mulf %8, %6 : vector<8x8x128xf32>
    %10 = vector.shape_cast %9 : vector<8x8x128xf32> to vector<64x128xf32>
    %11 = arith.truncf %10 : vector<64x128xf32> to vector<64x128xbf16>
    %c0_8 = arith.constant 0 : index
    %c0_9 = arith.constant 0 : index
    %12 = vector.load %arg5[%c0_8, %c0_9] : memref<128x128xbf16, #tpu.memory_space<vmem>>, vector<128x128xbf16>
    %cst_10 = arith.constant dense<0.000000e+00> : vector<64x128xf32>
    %13 = tpu.matmul %11, %12, %cst_10 {dimension_numbers = #tpu.dot_dimension_numbers<[1], [0], [0], [1], [0, 0, 1, 1], [], []>} : vector<64x128xbf16>, vector<128x128xbf16>, vector<64x128xf32> -> vector<64x128xf32>
    %14 = vector.shape_cast %13 : vector<64x128xf32> to vector<8x8x128xf32>
    %cst_11 = arith.constant dense<0xFF800000> : vector<8x128xf32>
    %15 = vector.multi_reduction <maximumf>, %14, %cst_11 [1] : vector<8x8x128xf32> to vector<8x128xf32>
    %16 = vector.shape_cast %15 : vector<8x128xf32> to vector<8x1x128xf32>
    %17 = vector.broadcast %16 : vector<8x1x128xf32> to vector<8x8x128xf32>
    %18 = arith.subf %14, %17 : vector<8x8x128xf32>
    %19 = math.exp %18 : vector<8x8x128xf32>
    %cst_12 = arith.constant dense<0.000000e+00> : vector<8x128xf32>
    %20 = vector.multi_reduction <add>, %19, %cst_12 [1] : vector<8x8x128xf32> to vector<8x128xf32>
    %21 = vector.shape_cast %20 : vector<8x128xf32> to vector<8x1x128xf32>
    %22 = tpu.reciprocal %21 : vector<8x1x128xf32> -> vector<8x1x128xf32>
    %23 = vector.broadcast %22 : vector<8x1x128xf32> to vector<8x8x128xf32>
    %24 = arith.mulf %19, %23 : vector<8x8x128xf32>
    %25 = arith.mulf %24, %6 : vector<8x8x128xf32>
    %cst_13 = arith.constant dense<0.000000e+00> : vector<8x128xf32>
    %26 = vector.multi_reduction <add>, %25, %cst_13 [1] : vector<8x8x128xf32> to vector<8x128xf32>
    %c0_14 = arith.constant 0 : index
    %c0_15 = arith.constant 0 : index
    %27 = vector.load %arg6[%c0_14, %c0_15] : memref<8x128xf32, #tpu.memory_space<vmem>>, vector<8x128xf32>
    tpu.vector_store %arg6[%c0_14, %c0_15], %26 {strides = array<i32>} : memref<8x128xf32, #tpu.memory_space<vmem>>, vector<8x128xf32>,
    return
  }
  func.func @transform_0(%arg0: i32) -> (i32, i32) {
    %c0_i32 = arith.constant 0 : i32
    %c0_i32_0 = arith.constant 0 : i32
    return %arg0, %c0_i32 : i32, i32
  }
  func.func @transform_1(%arg0: i32) -> (i32, i32) {
    %c0_i32 = arith.constant 0 : i32
    %c0_i32_0 = arith.constant 0 : i32
    return %arg0, %c0_i32 : i32, i32
  }
  func.func @transform_2(%arg0: i32) -> (i32, i32) {
    %c0_i32 = arith.constant 0 : i32
    %c0_i32_0 = arith.constant 0 : i32
    %c0_i32_1 = arith.constant 0 : i32
    return %c0_i32, %c0_i32_0 : i32, i32
  }
  func.func @transform_3(%arg0: i32) -> (i32, i32) {
    %c0_i32 = arith.constant 0 : i32
    %c0_i32_0 = arith.constant 0 : i32
    %c0_i32_1 = arith.constant 0 : i32
    return %c0_i32, %c0_i32_0 : i32, i32
  }
  func.func @transform_4(%arg0: i32) -> (i32, i32) {
    %c0_i32 = arith.constant 0 : i32
    %c0_i32_0 = arith.constant 0 : i32
    %c0_i32_1 = arith.constant 0 : i32
    return %c0_i32, %c0_i32_0 : i32, i32
  }
  func.func @transform_5(%arg0: i32) -> (i32, i32) {
    %c0_i32 = arith.constant 0 : i32
    %c0_i32_0 = arith.constant 0 : i32
    return %arg0, %c0_i32 : i32, i32
  }
}

</mosaic_0001>

<bundles_post_ra>
// kernel: tpu_custom_call.1
= control target key start
LH: loop header
LB: loop body
LE: loop exit
PB: predicated region body
PF: predicated region fallthrough
CT: control target
= control target key end

     0   :  { %10 = vsyncpa [#allocation3], 0  ;;  %s1247_s0 = inlined_call_operand.hbm [shape: bf16[8,32], index: 0, kind: input, shape index: {}]   ;;  %s1248_s1 = inlined_call_operand.hbm [shape: bf16[64,64], index: 1, kind: input, shape index: {}]   ;;  %s1249_s2 = inlined_call_operand.hbm [shape: bf16[32,128], index: 2, kind: input, shape index: {}]   ;;  %s1250_s3 = inlined_call_operand.hbm [shape: bf16[64,128], index: 3, kind: input, shape index: {}]   ;;  %s1251_s4 = inlined_call_operand.hbm [shape: bf16[128,128], index: 4, kind: input, shape index: {}]   ;;  %s1252_s5 = inlined_call_operand.hbm [shape: f32[8,128], index: 5, kind: output, shape index: {}]  }
   0x1   :  { %11 = vsyncpa [#allocation6], 0 }
   0x2   :  { %12 = vsyncpa [#allocation9], 0 }
   0x3   :  { %13 = vsyncpa [#allocation4], 0  ;;  %s1046_s18 = smov [#allocation5]   ;;  %s906_s22 = scalar_lea.hbm %s1248_s1, 512 }
   0x4   :  { %s29_s19 = sshll.u32 %s1046_s18, 4  ;;  %p907_p0 = scmp.ne.s32.totalorder %s1248_s1, %s906_s22  ;;  %s30_s19 = int_to_ptr.vmem [resolvable:$true] %s29_s19 }
   0x5   :  { %p910_p1 = scmp.lt.u32.totalorder %s906_s22, %s1248_s1 }
   0x7   :  { %p912_p2 = pnand %p910_p1, %p907_p0 }
   0x9   :  { %915 = shalt.err (!%p912_p2)
}
   0xa   :  { %s916_s27 = scalar_lea.vmem %s30_s19, 512  ;;  %p921_p4 = scmp.lt.s32.totalorder %s30_s19, %s30_s19 }
   0xb   :  { %p917_p3 = scmp.ne.s32.totalorder %s30_s19, %s916_s27  ;;  %p922_p5 = scmp.lt.s32.totalorder %s916_s27, %s916_s27 }
   0xd   :  { %p923_p6 = por %p922_p5, %p921_p4 }
   0xf   :  { %p924_p7 = pnand %p923_p6, %p917_p3 }
  0x11   :  { %927 = shalt.err (!%p924_p7)
}
  0x12   :  { %s1047_s28 = smov 64   ;;  %s1048_s29 = smov 4  }
  0x13   :  { %35 = dma.hbm_to_vmem [thread:$0]  %s1248_s1, 512, %s30_s19, [#allocation6], %s1047_s28, %s1047_s28, %s1048_s29  }
  0x14   :  { %s1049_s7 = smov [#allocation8]   ;;  %s1050_s9 = smov [#allocation2]  }
  0x15   :  { %s53_s8 = sshll.u32 %s1049_s7, 4  ;;  %s20_s10 = sshll.u32 %s1050_s9, 4  ;;  %s54_s8 = int_to_ptr.vmem [resolvable:$true] %s53_s8  ;;  %s21_s10 = int_to_ptr.vmem [resolvable:$true] %s20_s10 }
  0x16   :  { %s928_s13 = scalar_lea.hbm %s1250_s3, 512 }
  0x17   :  { %p929_p8 = scmp.ne.s32.totalorder %s1250_s3, %s928_s13  ;;  %p932_p9 = scmp.lt.u32.totalorder %s928_s13, %s1250_s3 }
  0x19   :  { %p934_p10 = pnand %p932_p9, %p929_p8 }
  0x1b   :  { %937 = shalt.err (!%p934_p10)
}
  0x1c   :  { %s938_s1 = scalar_lea.vmem %s54_s8, 512  ;;  %p943_p12 = scmp.lt.s32.totalorder %s54_s8, %s54_s8 }
  0x1d   :  { %p939_p11 = scmp.ne.s32.totalorder %s54_s8, %s938_s1  ;;  %p944_p13 = scmp.lt.s32.totalorder %s938_s1, %s938_s1 }
  0x1f   :  { %p945_p0 = por %p944_p13, %p943_p12 }
  0x21   :  { %p946_p1 = pnand %p945_p0, %p939_p11 }
  0x23   :  { %949 = shalt.err (!%p946_p1)
}
  0x24   :  { %59 = dma.hbm_to_vmem [thread:$0]  %s1250_s3, 512, %s54_s8, [#allocation9], %s1047_s28, %s1047_s28, %s1048_s29  }
  0x25   :  { %s950_s22 = scalar_lea.hbm %s1247_s0, 64 }
  0x26   :  { %p951_p2 = scmp.ne.s32.totalorder %s1247_s0, %s950_s22  ;;  %p954_p3 = scmp.lt.u32.totalorder %s950_s22, %s1247_s0 }
  0x28   :  { %p956_p4 = pnand %p954_p3, %p951_p2 }
  0x2a   :  { %959 = shalt.err (!%p956_p4)
}
  0x2b   :  { %s960_s27 = scalar_lea.vmem %s21_s10, 64  ;;  %p965_p6 = scmp.lt.s32.totalorder %s21_s10, %s21_s10 }
  0x2c   :  { %p961_p5 = scmp.ne.s32.totalorder %s21_s10, %s960_s27  ;;  %p966_p7 = scmp.lt.s32.totalorder %s960_s27, %s960_s27 }
  0x2e   :  { %p967_p8 = por %p966_p7, %p965_p6 }
  0x30   :  { %p968_p9 = pnand %p967_p8, %p961_p5 }
  0x32   :  { %971 = shalt.err (!%p968_p9)
}
  0x33   :  { %23 = dma.hbm_to_vmem [thread:$0]  %s1247_s0, 64, %s21_s10, [#allocation3]  }
  0x34   :  { %s1051_s6 = smov [#allocation7]   ;;  %s1052_s8 = smov [#allocation10]  }
  0x35   :  { %s41_s7 = sshll.u32 %s1051_s6, 4  ;;  %s65_s9 = sshll.u32 %s1052_s8, 4  ;;  %s42_s7 = int_to_ptr.vmem [resolvable:$true] %s41_s7  ;;  %s66_s9 = int_to_ptr.vmem [resolvable:$true] %s65_s9 }
  0x36   :  { %s972_s13 = scalar_lea.hbm %s1249_s2, 256 }
  0x37   :  { %p973_p10 = scmp.ne.s32.totalorder %s1249_s2, %s972_s13  ;;  %p976_p11 = scmp.lt.u32.totalorder %s972_s13, %s1249_s2 }
  0x39   :  { %p978_p12 = pnand %p976_p11, %p973_p10 }
  0x3b   :  { %981 = shalt.err (!%p978_p12)
}
  0x3c   :  { %s982_s0 = scalar_lea.vmem %s42_s7, 256  ;;  %p987_p0 = scmp.lt.s32.totalorder %s42_s7, %s42_s7 }
  0x3d   :  { %p983_p13 = scmp.ne.s32.totalorder %s42_s7, %s982_s0  ;;  %p988_p1 = scmp.lt.s32.totalorder %s982_s0, %s982_s0 }
  0x3f   :  { %p989_p2 = por %p988_p1, %p987_p0 }
  0x41   :  { %p990_p3 = pnand %p989_p2, %p983_p13 }
  0x43   :  { %993 = shalt.err (!%p990_p3)
}
  0x44   :  { %47 = dma.hbm_to_vmem [thread:$0]  %s1249_s2, 256, %s42_s7, [#allocation6], %s1047_s28, %s1047_s28, %s1048_s29  }
  0x45   :  { %s994_s20 = scalar_lea.hbm %s1251_s4, 1024 }
  0x46   :  { %p995_p4 = scmp.ne.s32.totalorder %s1251_s4, %s994_s20  ;;  %p998_p5 = scmp.lt.u32.totalorder %s994_s20, %s1251_s4 }
  0x48   :  { %p1000_p6 = pnand %p998_p5, %p995_p4 }
  0x4a   :  { %1003 = shalt.err (!%p1000_p6)
}
  0x4b   :  { %s1004_s25 = scalar_lea.vmem %s66_s9, 1024  ;;  %p1009_p8 = scmp.lt.s32.totalorder %s66_s9, %s66_s9 }
  0x4c   :  { %p1005_p7 = scmp.ne.s32.totalorder %s66_s9, %s1004_s25  ;;  %p1010_p9 = scmp.lt.s32.totalorder %s1004_s25, %s1004_s25 }
  0x4e   :  { %p1011_p10 = por %p1010_p9, %p1009_p8 }
  0x50   :  { %p1012_p11 = pnand %p1011_p10, %p1005_p7 }
  0x52   :  { %1015 = shalt.err (!%p1012_p11)
}
  0x53   :  { %71 = dma.hbm_to_vmem [thread:$0]  %s1251_s4, 1024, %s66_s9, [#allocation9], %s1047_s28, %s1047_s28, %s1048_s29  }
  0x54   :  { %1038 = dma.done.wait [#allocation3], 64  }
  0x55   :  { %1039 = vsyncadd [#allocation3], 4294967232 }
  0x56   :  { %1040 = dma.done.wait [#allocation6], 768  }
  0x57   :  { %1041 = vsyncadd [#allocation6], 4294966528 }
  0x58   :  { %1042 = dma.done.wait [#allocation9], 1536  }
  0x59   :  { %1043 = vsyncadd [#allocation9], 4294965760  ;;  %v1053_v0 = vmov 0.0   ;;  %vm1054_vm0 = vmmov 0   ;;  %v856_v1 = vld [vmem:[#allocation7] sm:$0xff]   ;;  %v857_v2 = vld [vmem:[#allocation7 + $0x8] sm:$0xff]   ;;  %v292_v22 = vlaneseq }
  0x5a   :  { %797 = vmatprep.subr.bf16.mxu1 %v1053_v0  ;;  %801 = vmatprep.mubr.msk.bf16.mxu1 %vm1054_vm0, %v1053_v0  ;;  %v858_v3 = vld [vmem:[#allocation8] sm:$0xff]   ;;  %v88_v4 = vld [vmem:[#allocation2] sm:$0xf]  ;;  %vm105_vm1 = vcmask 261120   ;;  %v862_v6 = vld [vmem:[#allocation5] sm:$0xff]   ;;  %vm209_vm2 = vcmask 523264  }
  0x5b   :  { %798 = vmatpush3.bf16.msra.mxu1 %v856_v1  ;;  %v859_v5 = vld [vmem:[#allocation8 + $0x8] sm:$0xff]   ;;  %v860_v7 = vld [vmem:[#allocation8 + $0x10] sm:$0xff]   ;;  %v866_v8 = vld [vmem:[#allocation10] sm:$0xff]   ;;  %v1055_v20 = vmov 1966171168   ;;  %v293_v24 = vshrl.u32 %v292_v22, 7 }
  0x5c   :  { %799 = vmatprep.subr.bf16.mxu1 %v1053_v0  ;;  %v867_v9 = vld [vmem:[#allocation10 + $0x8] sm:$0xff]   ;;  %v861_v10 = vld [vmem:[#allocation8 + $0x18] sm:$0xff]   ;;  %821 = vmatprep.subr.bf16.mxu0 %v866_v8  ;;  %v864_v12 = vld [vmem:[#allocation5 + $0x10] sm:$0xff]   ;;  %v290_v21 = vunpack.c.l.s4 %v1055_v20  ;;  %vm718_vm3 = vcmask 1041409   ;;  %vm720_vm4 = vcmask 1042434   ;;  %vm722_vm5 = vcmask 1043459  }
  0x5d   :  { %822 = vmatpush3.bf16.msra.mxu0 %v866_v8  ;;  %v863_v11 = vld [vmem:[#allocation5 + $0x8] sm:$0xff]   ;;  %v865_v13 = vld [vmem:[#allocation5 + $0x18] sm:$0xff]   ;;  %v868_v14 = vld [vmem:[#allocation10 + $0x10] sm:$0xff]   ;;  %v339_v37 = vsub.s32 0, %v293_v24  ;;  %vm724_vm6 = vcmask 1044484   ;;  %vm726_vm7 = vcmask 1045509  }
  0x5e   :  { %823 = vmatprep.subr.bf16.mxu0 %v867_v9  ;;  %v869_v15 = vld [vmem:[#allocation10 + $0x18] sm:$0xff]   ;;  %v870_v16 = vld [vmem:[#allocation10 + $0x20] sm:$0xff]   ;;  %v871_v17 = vld [vmem:[#allocation10 + $0x28] sm:$0xff]   ;;  %v291_v23 = vunpack.c.0.s8 %v290_v21  ;;  %vm728_vm8 = vcmask 1046534   ;;  %s1056_s4 = smov [#allocation11]   ;;  %vm730_vm9 = vcmask 1047559  }
  0x5f   :  { %800 = vmatpush3.bf16.msra.mxu1 %v857_v2  ;;  %v872_v18 = vld [vmem:[#allocation10 + $0x30] sm:$0xff]   ;;  %v873_v19 = vld [vmem:[#allocation10 + $0x38] sm:$0xff]   ;;  %s740_s28 = sshll.u32 %s1056_s4, 4  ;;  %s741_s28 = int_to_ptr.vmem [resolvable:$true] %s740_s28 }
  0x60   :  { %805 = vmatprep.subr.bf16.mxu1 %v858_v3  ;;  %v294_v25 = vsub.s32 %v291_v23, %v293_v24  ;;  %s1016_s29 = scalar_lea.vmem %s741_s28, 128  ;;  %p1021_p13 = scmp.lt.s32.totalorder %s741_s28, %s741_s28 }
  0x61   :  { %824 = vmatpush3.bf16.msra.mxu0 %v867_v9  ;;  %p1017_p12 = scmp.ne.s32.totalorder %s741_s28, %s1016_s29  ;;  %p1022_p0 = scmp.lt.s32.totalorder %s1016_s29, %s1016_s29 }
  0x62   :  { %802 = vmatmul.mubr.msk.bf16.vlgmr.msra.gmra.mrb[0].mxu1 %vm105_vm1, %v88_v4  ;;  %825 = vmatprep.subr.bf16.mxu0 %v868_v14 }
  0x63   :  { %806 = vmatpush3.bf16.msra.mxu1 %v858_v3  ;;  %813 = vmatprep.mubr.msk.bf16.mxu1 %vm209_vm2, %v862_v6  ;;  %p1023_p1 = por %p1022_p0, %p1021_p13 }
  0x64   :  { %807 = vmatprep.subr.bf16.mxu1 %v859_v5 }
  0x65   :  { %826 = vmatpush3.bf16.msra.mxu0 %v868_v14  ;;  %p1024_p2 = pnand %p1023_p1, %p1017_p12 }
  0x66   :  { %827 = vmatprep.subr.bf16.mxu0 %v869_v15 }
  0x67   :  { %808 = vmatpush3.bf16.msra.mxu1 %v859_v5 }
  0x68   :  { %809 = vmatprep.subr.bf16.mxu1 %v860_v7 }
  0x69   :  { %828 = vmatpush3.bf16.msra.mxu0 %v869_v15 }
  0x6a   :  { %829 = vmatprep.subr.bf16.mxu0 %v870_v16 }
  0x6b   :  { %810 = vmatpush3.bf16.msra.mxu1 %v860_v7 }
  0x6c   :  { %811 = vmatprep.subr.bf16.mxu1 %v861_v10 }
  0x6d   :  { %830 = vmatpush3.bf16.msra.mxu0 %v870_v16 }
  0x6e   :  { %831 = vmatprep.subr.bf16.mxu0 %v871_v17 }
  0x6f   :  { %812 = vmatpush3.bf16.msra.mxu1 %v861_v10 }
  0x71   :  { %832 = vmatpush3.bf16.msra.mxu0 %v871_v17 }
  0x72   :  { %814 = vmatmul.mubr.msk.bf16.vlgmr.msra.gmra.mrb[4].mxu1 %vm209_vm2, %v863_v11  ;;  %833 = vmatprep.subr.bf16.mxu0 %v872_v18 }
  0x73   :  { %817 = vmatprep.mubr.msk.bf16.mxu1 %vm209_vm2, %v864_v12 }
  0x75   :  { %834 = vmatpush3.bf16.msra.mxu0 %v872_v18 }
  0x76   :  { %835 = vmatprep.subr.bf16.mxu0 %v873_v19 }
  0x79   :  { %836 = vmatpush3.bf16.msra.mxu0 %v873_v19 }
  0x7a   :  { %818 = vmatmul.mubr.msk.bf16.gmra.mrb[8].mxu1 %vm209_vm2, %v865_v13 }
 0x135   :  { %v143_v26 = vpop.f32.mrb[0].mxu1 }
 0x136   :  { %v295_v27 = vrot.slane %v143_v26, %v294_v25  ;;  %v803_v28 = vpop.f32.mrb[1].mxu1  ;;  %v288_v31 = vcombine.high %v143_v26, %v143_v26 }
 0x137   :  { %v146_v29 = vpop.f32.mrb[2].mxu1 }
 0x138   :  { %v804_v30 = vpop.f32.mrb[3].mxu1  ;;  %v303_v32 = vcombine.high %v295_v27, %v295_v27  ;;  %v311_v33 = vrot.slane %v295_v27, %v294_v25  ;;  %v302_v34 = vrot.slane %v288_v31, %v294_v25 }
 0x13a   :  { %v325_v35 = vrot.slane %v303_v32, %v294_v25  ;;  %v333_v36 = vcombine.high %v311_v33, %v311_v33  ;;  %v304_v38 = vcombine.high %v302_v34, %v302_v34  ;;  %v318_v40 = vrot.slane %v302_v34, %v294_v25 }
 0x13b   :  { %v340_v43 = vrot.slane %v311_v33, %v339_v37 }
 0x13c   :  { %v335_v39 = vcombine.high %v325_v35, %v325_v35  ;;  %v348_v41 = vrot.slane %v333_v36, %v339_v37  ;;  %v332_v47 = vrot.slane %v304_v38, %v294_v25  ;;  %v344_v50 = vrot.slane %v325_v35, %v339_v37 }
 0x13d   :  { %v334_v53 = vcombine.high %v318_v40, %v318_v40  ;;  %v356_v60 = vrot.slane %v318_v40, %v339_v37 }
 0x13e   :  { %v352_v46 = vrot.slane %v335_v39, %v339_v37  ;;  %v336_v56 = vcombine.high %v332_v47, %v332_v47  ;;  %v360_v2 = vrot.slane %v332_v47, %v339_v37 }
 0x13f   :  { %v364_v58 = vrot.slane %v334_v53, %v339_v37 }
 0x140   :  { %v368_v63 = vrot.slane %v336_v56, %v339_v37 }
 0x145   :  { %v1163_v42 = vpop.f32.mrb[4].mxu1 }
 0x146   :  { %v379_v44 = vmul.f32 %v1163_v42, %v348_v41  ;;  %v1166_v45 = vpop.f32.mrb[5].mxu1 }
 0x147   :  { %v377_v48 = vmul.f32 %v340_v43, %v1166_v45  ;;  %v1169_v49 = vpop.f32.mrb[6].mxu1 }
 0x148   :  { %v380_v51 = vmul.f32 %v1169_v49, %v352_v46  ;;  %v1172_v52 = vpop.f32.mrb[7].mxu1 }
 0x149   :  { %v378_v54 = vmul.f32 %v344_v50, %v1172_v52 }
 0x14a   :  { %v386_v55 = vpack.c.bf16 %v380_v51, %v379_v44 }
 0x14b   :  { %v385_v57 = vpack.c.bf16 %v378_v54, %v377_v48 }
 0x14d   :  { %v1175_v59 = vpop.f32.mrb[8].mxu1  ;;  %837 = vmatprep.mubr.bf16.mxu0 %v385_v57 }
 0x14e   :  { %v383_v61 = vmul.f32 %v1175_v59, %v364_v58  ;;  %v1178_v62 = vpop.f32.mrb[9].mxu1  ;;  %838 = vmatmul.mubr.bf16.vlgmr.msra.gmra.mrb[0].mxu0 %v386_v55 }
 0x14f   :  { %v381_v0 = vmul.f32 %v356_v60, %v1178_v62  ;;  %v1181_v1 = vpop.f32.mrb[10].mxu1 }
 0x150   :  { %v384_v3 = vmul.f32 %v1181_v1, %v368_v63  ;;  %v1184_v4 = vpop.f32.mrb[11].mxu1 }
 0x151   :  { %v382_v5 = vmul.f32 %v360_v2, %v1184_v4 }
 0x152   :  { %v388_v6 = vpack.c.bf16 %v384_v3, %v383_v61 }
 0x153   :  { %v387_v7 = vpack.c.bf16 %v382_v5, %v381_v0 }
 0x155   :  { %841 = vmatprep.mubr.bf16.mxu0 %v387_v7 }
 0x156   :  { %842 = vmatmul.mubr.bf16.gmra.mrb[4].mxu0 %v388_v6 }
 0x221   :  { %v839_v8 = vpop.f32.mrb[0].mxu0 }
 0x222   :  { %v530_v9 = vrot.slane %v839_v8, 4  ;;  %v487_v10 = vpop.f32.mrb[1].mxu0 }
 0x223   :  { %v518_v11 = vrot.slane %v487_v10, 4  ;;  %v840_v12 = vpop.f32.mrb[2].mxu0 }
 0x224   :  { %v531_v13 = vmax.f32 %v839_v8, %v530_v9  ;;  %v536_v14 = vrot.slane %v840_v12, 4  ;;  %v490_v15 = vpop.f32.mrb[3].mxu0 }
 0x225   :  { %v519_v16 = vmax.f32 %v487_v10, %v518_v11  ;;  %v524_v17 = vrot.slane %v490_v15, 4 }
 0x226   :  { %v532_v18 = vrot.slane %v531_v13, 2  ;;  %v537_v19 = vmax.f32 %v840_v12, %v536_v14 }
 0x227   :  { %v520_v20 = vrot.slane %v519_v16, 2  ;;  %v525_v21 = vmax.f32 %v490_v15, %v524_v17 }
 0x228   :  { %v533_v22 = vmax.f32 %v531_v13, %v532_v18  ;;  %v538_v23 = vrot.slane %v537_v19, 2 }
 0x229   :  { %v521_v24 = vmax.f32 %v519_v16, %v520_v20  ;;  %v526_v25 = vrot.slane %v525_v21, 2  ;;  %v843_v26 = vpop.f32.mrb[4].mxu0 }
 0x22a   :  { %v534_v27 = vrot.slane %v533_v22, 1  ;;  %v539_v28 = vmax.f32 %v537_v19, %v538_v23  ;;  %v554_v29 = vrot.slane %v843_v26, 4  ;;  %v503_v30 = vpop.f32.mrb[5].mxu0 }
 0x22b   :  { %v522_v31 = vrot.slane %v521_v24, 1  ;;  %v527_v32 = vmax.f32 %v525_v21, %v526_v25  ;;  %v542_v33 = vrot.slane %v503_v30, 4  ;;  %v844_v34 = vpop.f32.mrb[6].mxu0 }
 0x22c   :  { %v535_v35 = vmax.f32 %v533_v22, %v534_v27  ;;  %v540_v36 = vrot.slane %v539_v28, 1  ;;  %v555_v37 = vmax.f32 %v843_v26, %v554_v29  ;;  %v560_v38 = vrot.slane %v844_v34, 4  ;;  %v506_v39 = vpop.f32.mrb[7].mxu0 }
 0x22d   :  { %v523_v40 = vmax.f32 %v521_v24, %v522_v31  ;;  %v528_v41 = vrot.slane %v527_v32, 1  ;;  %v543_v43 = vmax.f32 %v503_v30, %v542_v33  ;;  %v548_v44 = vrot.slane %v506_v39, 4 }
 0x22e   :  { %v568_v46 = vsub.f32 %v839_v8, %v535_v35  ;;  %v541_v47 = vmax.f32 %v539_v28, %v540_v36  ;;  %v556_v48 = vrot.slane %v555_v37, 2  ;;  %v561_v50 = vmax.f32 %v844_v34, %v560_v38 }
 0x22f   :  { %v566_v51 = vsub.f32 %v487_v10, %v523_v40  ;;  %v529_v53 = vmax.f32 %v527_v32, %v528_v41  ;;  %v544_v54 = vrot.slane %v543_v43, 2  ;;  %v549_v55 = vmax.f32 %v506_v39, %v548_v44 }
 0x230   :  { %v578_v56 = vmul.f32 1.442695, %v568_v46  ;;  %v569_v57 = vsub.f32 %v840_v12, %v541_v47  ;;  %v557_v58 = vmax.f32 %v555_v37, %v556_v48  ;;  %v562_v60 = vrot.slane %v561_v50, 2 }
 0x231   :  { %v574_v61 = vmul.f32 1.442695, %v566_v51  ;;  %v567_v63 = vsub.f32 %v490_v15, %v529_v53  ;;  %v545_v0 = vmax.f32 %v543_v43, %v544_v54  ;;  %v550_v2 = vrot.slane %v549_v55, 2 }
 0x232   :  { %874 = vpow2.f32 %v578_v56  ;;  %v580_v3 = vmul.f32 1.442695, %v569_v57  ;;  %v558_v5 = vrot.slane %v557_v58, 1  ;;  %v563_v6 = vmax.f32 %v561_v50, %v562_v60 }
 0x233   :  { %876 = vpow2.f32 %v574_v61  ;;  %v576_v7 = vmul.f32 1.442695, %v567_v63  ;;  %v546_v8 = vrot.slane %v545_v0, 1  ;;  %v551_v9 = vmax.f32 %v549_v55, %v550_v2 }
 0x234   :  { %878 = vpow2.f32 %v580_v3  ;;  %v559_v10 = vmax.f32 %v557_v58, %v558_v5  ;;  %v564_v11 = vrot.slane %v563_v6, 1 }
 0x235   :  { %880 = vpow2.f32 %v576_v7  ;;  %v547_v13 = vmax.f32 %v545_v0, %v546_v8  ;;  %v552_v12 = vrot.slane %v551_v9, 1 }
 0x236   :  { %v572_v14 = vsub.f32 %v843_v26, %v559_v10  ;;  %v565_v16 = vmax.f32 %v563_v6, %v564_v11 }
 0x237   :  { %v570_v17 = vsub.f32 %v503_v30, %v547_v13  ;;  %v553_v15 = vmax.f32 %v551_v9, %v552_v12 }
 0x238   :  { %v586_v18 = vmul.f32 1.442695, %v572_v14  ;;  %v573_v19 = vsub.f32 %v844_v34, %v565_v16 }
 0x239   :  { %v582_v20 = vmul.f32 1.442695, %v570_v17  ;;  %v571_v21 = vsub.f32 %v506_v39, %v553_v15 }
 0x23a   :  { %882 = vpow2.f32 %v586_v18  ;;  %v588_v22 = vmul.f32 1.442695, %v573_v19 }
 0x23b   :  { %884 = vpow2.f32 %v582_v20  ;;  %v584_v23 = vmul.f32 1.442695, %v571_v21 }
 0x23c   :  { %v1187_v24 = vpop.eup %874  ;;  %886 = vpow2.f32 %v588_v22 }
 0x23d   :  { %v1189_v25 = vpop.eup %876  ;;  %v602_v27 = vrot.slane %v1187_v24, 4  ;;  %888 = vpow2.f32 %v584_v23 }
 0x23e   :  { %v1192_v26 = vpop.eup %878  ;;  %v590_v28 = vrot.slane %v1189_v25, 4 }
 0x23f   :  { %v1195_v29 = vpop.eup %880  ;;  %v603_v30 = vadd.f32 %v1187_v24, %v602_v27  ;;  %v608_v31 = vrot.slane %v1192_v26, 4 }
 0x240   :  { %v591_v32 = vadd.f32 %v1189_v25, %v590_v28  ;;  %v596_v33 = vrot.slane %v1195_v29, 4 }
 0x241   :  { %v604_v34 = vrot.slane %v603_v30, 2  ;;  %v609_v35 = vadd.f32 %v1192_v26, %v608_v31 }
 0x242   :  { %v592_v36 = vrot.slane %v591_v32, 2  ;;  %v597_v37 = vadd.f32 %v1195_v29, %v596_v33 }
 0x243   :  { %v605_v38 = vadd.f32 %v604_v34, %v603_v30  ;;  %v610_v39 = vrot.slane %v609_v35, 2 }
 0x244   :  { %v1203_v40 = vpop.eup %882  ;;  %v593_v41 = vadd.f32 %v592_v36, %v591_v32  ;;  %v598_v43 = vrot.slane %v597_v37, 2 }
 0x245   :  { %v1205_v44 = vpop.eup %884  ;;  %v606_v46 = vrot.slane %v605_v38, 1  ;;  %v611_v47 = vadd.f32 %v610_v39, %v609_v35  ;;  %v626_v48 = vrot.slane %v1203_v40, 4 }
 0x246   :  { %v1208_v50 = vpop.eup %886  ;;  %v594_v51 = vrot.slane %v593_v41, 1  ;;  %v599_v53 = vadd.f32 %v598_v43, %v597_v37  ;;  %v614_v54 = vrot.slane %v1205_v44, 4 }
 0x247   :  { %v1211_v55 = vpop.eup %888  ;;  %v607_v56 = vadd.f32 %v606_v46, %v605_v38  ;;  %v612_v57 = vrot.slane %v611_v47, 1  ;;  %v627_v58 = vadd.f32 %v1203_v40, %v626_v48  ;;  %v632_v60 = vrot.slane %v1208_v50, 4 }
 0x248   :  { %v595_v61 = vadd.f32 %v594_v51, %v593_v41  ;;  %v600_v63 = vrot.slane %v599_v53, 1  ;;  %v615_v0 = vadd.f32 %v1205_v44, %v614_v54  ;;  %v620_v2 = vrot.slane %v1211_v55, 4 }
 0x249   :  { %890 = vrcp.f32 %v607_v56  ;;  %v613_v3 = vadd.f32 %v612_v57, %v611_v47  ;;  %v628_v5 = vrot.slane %v627_v58, 2  ;;  %v633_v6 = vadd.f32 %v1208_v50, %v632_v60 }
 0x24a   :  { %892 = vrcp.f32 %v595_v61  ;;  %v601_v7 = vadd.f32 %v600_v63, %v599_v53  ;;  %v616_v8 = vrot.slane %v615_v0, 2  ;;  %v621_v9 = vadd.f32 %v1211_v55, %v620_v2 }
 0x24b   :  { %894 = vrcp.f32 %v613_v3  ;;  %v629_v10 = vadd.f32 %v628_v5, %v627_v58  ;;  %v634_v11 = vrot.slane %v633_v6, 2 }
 0x24c   :  { %896 = vrcp.f32 %v601_v7  ;;  %v617_v13 = vadd.f32 %v616_v8, %v615_v0  ;;  %v622_v12 = vrot.slane %v621_v9, 2 }
 0x24d   :  { %v630_v14 = vrot.slane %v629_v10, 1  ;;  %v635_v16 = vadd.f32 %v634_v11, %v633_v6 }
 0x24e   :  { %v618_v17 = vrot.slane %v617_v13, 1  ;;  %v623_v15 = vadd.f32 %v622_v12, %v621_v9 }
 0x24f   :  { %v631_v18 = vadd.f32 %v630_v14, %v629_v10  ;;  %v636_v19 = vrot.slane %v635_v16, 1 }
 0x250   :  { %v619_v20 = vadd.f32 %v618_v17, %v617_v13  ;;  %v624_v21 = vrot.slane %v623_v15, 1 }
 0x251   :  { %v637_v22 = vadd.f32 %v636_v19, %v635_v16  ;;  %898 = vrcp.f32 %v631_v18 }
 0x252   :  { %v625_v23 = vadd.f32 %v624_v21, %v623_v15  ;;  %900 = vrcp.f32 %v619_v20 }
 0x253   :  { %v891_v27 = vpop.eup %890  ;;  %902 = vrcp.f32 %v637_v22 }
 0x254   :  { %v893_v28 = vpop.eup %892  ;;  %904 = vrcp.f32 %v625_v23  ;;  %v648_v30 = vmul.f32 %v891_v27, %v1187_v24 }
 0x255   :  { %v895_v31 = vpop.eup %894  ;;  %v646_v32 = vmul.f32 %v893_v28, %v1189_v25 }
 0x256   :  { %v897_v33 = vpop.eup %896  ;;  %v649_v34 = vmul.f32 %v895_v31, %v1192_v26  ;;  %v656_v35 = vmul.f32 %v1163_v42, %v648_v30 }
 0x257   :  { %v647_v36 = vmul.f32 %v897_v33, %v1195_v29  ;;  %v654_v37 = vmul.f32 %v646_v32, %v1166_v45 }
 0x258   :  { %v657_v38 = vmul.f32 %v1169_v49, %v649_v34  ;;  %v674_v39 = vrot.slane %v656_v35, 4 }
 0x259   :  { %v655_v41 = vmul.f32 %v647_v36, %v1172_v52  ;;  %v662_v43 = vrot.slane %v654_v37, 4 }
 0x25a   :  { %v675_v46 = vadd.f32 %v674_v39, %v656_v35  ;;  %v680_v24 = vrot.slane %v657_v38, 4 }
 0x25b   :  { %v899_v47 = vpop.eup %898  ;;  %v663_v48 = vadd.f32 %v662_v43, %v654_v37  ;;  %v668_v25 = vrot.slane %v655_v41, 4 }
 0x25c   :  { %v901_v51 = vpop.eup %900  ;;  %v652_v26 = vmul.f32 %v899_v47, %v1203_v40  ;;  %v676_v53 = vrot.slane %v675_v46, 2  ;;  %v681_v42 = vadd.f32 %v680_v24, %v657_v38 }
 0x25d   :  { %v903_v54 = vpop.eup %902  ;;  %v650_v29 = vmul.f32 %v901_v51, %v1205_v44  ;;  %v664_v45 = vrot.slane %v663_v48, 2  ;;  %v669_v56 = vadd.f32 %v668_v25, %v655_v41 }
 0x25e   :  { %v905_v49 = vpop.eup %904  ;;  %v653_v57 = vmul.f32 %v903_v54, %v1208_v50  ;;  %v660_v52 = vmul.f32 %v1175_v59, %v652_v26  ;;  %v677_v58 = vadd.f32 %v676_v53, %v675_v46  ;;  %v682_v60 = vrot.slane %v681_v42, 2 }
 0x25f   :  { %v651_v61 = vmul.f32 %v905_v49, %v1211_v55  ;;  %v658_v63 = vmul.f32 %v650_v29, %v1178_v62  ;;  %v665_v0 = vadd.f32 %v664_v45, %v663_v48  ;;  %v670_v40 = vrot.slane %v669_v56, 2 }
 0x260   :  { %v661_v2 = vmul.f32 %v1181_v1, %v653_v57  ;;  %v683_v3 = vadd.f32 %v682_v60, %v681_v42  ;;  %v698_v5 = vrot.slane %v660_v52, 4  ;;  %v678_v50 = vrot.slane %v677_v58, 1 }
 0x261   :  { %v659_v44 = vmul.f32 %v651_v61, %v1184_v4  ;;  %v666_v6 = vrot.slane %v665_v0, 1  ;;  %v671_v7 = vadd.f32 %v670_v40, %v669_v56  ;;  %v686_v8 = vrot.slane %v658_v63, 4 }
 0x262   :  { %v699_v9 = vadd.f32 %v698_v5, %v660_v52  ;;  %v704_v59 = vrot.slane %v661_v2, 4  ;;  %v684_v11 = vrot.slane %v683_v3, 1  ;;  %v679_v15 = vadd.f32 %v678_v50, %v677_v58 }
 0x263   :  { %v672_v10 = vrot.slane %v671_v7, 1  ;;  %v687_v13 = vadd.f32 %v686_v8, %v658_v63  ;;  %v692_v55 = vrot.slane %v659_v44, 4  ;;  %v667_v14 = vadd.f32 %v666_v6, %v665_v0 }
 0x264   :  { %v700_v12 = vrot.slane %v699_v9, 2  ;;  %v705_v62 = vadd.f32 %v704_v59, %v661_v2  ;;  %v685_v19 = vadd.f32 %v684_v11, %v683_v3 }
 0x265   :  { %v673_v1 = vadd.f32 %v672_v10, %v671_v7  ;;  %v688_v16 = vrot.slane %v687_v13, 2  ;;  %v693_v17 = vadd.f32 %v692_v55, %v659_v44 }
 0x266   :  { %v701_v4 = vadd.f32 %v700_v12, %v699_v9  ;;  %v706_v18 = vrot.slane %v705_v62, 2 }
 0x267   :  { %v689_v20 = vadd.f32 %v688_v16, %v687_v13  ;;  %v694_v21 = vrot.slane %v693_v17, 2  ;;  %v719_v22 = vsel %vm718_vm3, %v673_v1, %v667_v14 }
 0x268   :  { %v707_v23 = vadd.f32 %v706_v18, %v705_v62  ;;  %v721_v27 = vsel %vm720_vm4, %v679_v15, %v719_v22  ;;  %v702_v32 = vrot.slane %v701_v4, 1 }
 0x269   :  { %v690_v28 = vrot.slane %v689_v20, 1  ;;  %v695_v30 = vadd.f32 %v694_v21, %v693_v17  ;;  %v723_v31 = vsel %vm722_vm5, %v685_v19, %v721_v27 }
 0x26a   :  { %v708_v35 = vrot.slane %v707_v23, 1  ;;  %v703_v38 = vadd.f32 %v702_v32, %v701_v4 }
 0x26b   :  { %v691_v33 = vadd.f32 %v690_v28, %v689_v20  ;;  %v696_v34 = vrot.slane %v695_v30, 1 }
 0x26c   :  { %v709_v39 = vadd.f32 %v708_v35, %v707_v23 }
 0x26d   :  { %v697_v36 = vadd.f32 %v696_v34, %v695_v30  ;;  %v725_v37 = vsel %vm724_vm6, %v691_v33, %v723_v31 }
 0x26f   :  { %v727_v41 = vsel %vm726_vm7, %v697_v36, %v725_v37 }
 0x270   :  { %v729_v43 = vsel %vm728_vm8, %v703_v38, %v727_v41 }
 0x271   :  { %v731_v46 = vsel %vm730_vm9, %v709_v39, %v729_v43 }
 0x272   :  { %733 = vst [vmem:[#allocation11] sm:$0xff] %v731_v46 }
 0x273   :  { %1027 = shalt.err (!%p1024_p2)
}
 0x274   :  { %s1028_s30 = scalar_lea.hbm %s1252_s5, 128 }
 0x275   :  { %p1029_p3 = scmp.ne.s32.totalorder %s1252_s5, %s1028_s30  ;;  %p1032_p4 = scmp.lt.u32.totalorder %s1028_s30, %s1252_s5 }
 0x277   :  { %p1034_p5 = pnand %p1032_p4, %p1029_p3 }
 0x279   :  { %1037 = shalt.err (!%p1034_p5)
}
 0x27a   :  { %743 = dma.vmem_to_hbm [thread:$0]  %s741_s28, 128, %s1252_s5, [#allocation4]  }
 0x27b   :  { %1044 = dma.done.wait [#allocation4], 128  }
 0x27c   :  { %1045 = vsyncadd [#allocation4], 4294967168 }
 0x27d   :  { %747 = vsyncpa [#allocation3], 1 }
 0x27e   :  { %748 = vsyncpa [#allocation6], 1 }
 0x27f   :  { %749 = vsyncpa [#allocation9], 1 }
 0x280   :  { %750 = vsyncpa [#allocation4], 1 }

</bundles_post_ra>
